<compile_context>
chip_gen: v6e
topology: v6e:2x2x1
jax: 0.10.0
libtpu: 0.0.40
codegen_flags: <defaults>
</compile_context>

<pallas_src>
import functools

import jax
import jax.numpy as jnp
from jax import lax
from jax.experimental import pallas as pl
from jax.experimental.pallas import tpu as pltpu


# ----------------------------------------------------------------------------
# Fused kernel: mean -> cosine similarity -> one-pass rank top-k -> gather.
# Refs (batch dim squeezed by the BlockSpec):
#   x_ref: [N, H], mem_ref: [M, H], out_ref: [top_k, H]
# ----------------------------------------------------------------------------
def _task_retrival_kernel(x_ref, mem_ref, out_ref, *, top_k):
    x = x_ref[...].astype(jnp.float32)        # [N, H]
    mem = mem_ref[...].astype(jnp.float32)    # [M, H]
    n = x.shape[0]
    m = mem.shape[0]

    # task_emb = mean(x, axis=0, keepdims=True)
    task = jnp.sum(x, axis=0, keepdims=True) * (1.0 / n)            # [1, H]

    # Cosine similarity, all VPU/XLU (contraction is tiny; skip the MXU).
    # The two independent lane-axis reduces are issued back-to-back so their
    # XLU drains overlap.
    num = jnp.sum(mem * task, axis=1, keepdims=True)                # [M, 1]
    ss_mem = jnp.sum(mem * mem, axis=1, keepdims=True)              # [M, 1]
    ss_task = jnp.sum(task * task)                                  # scalar
    eps = 1e-8
    # 1 / max(||mem||*||task||, eps) == rsqrt(max(ss_mem*ss_task, eps^2)) (EUP)
    scores = num * lax.rsqrt(jnp.maximum(ss_mem * ss_task, eps * eps))  # [M,1]

    # ---- One-pass rank-based top-k (fully parallel, no serial max chain) ----
    # beats[i, j] = scores[i] > scores[j]  OR  (equal AND i < j)
    # rank[j]     = #elements beating j  ->  rank 0 is the best, ties go to
    # the lowest index (matches torch.topk / lax.top_k ordering).
    s_i = jnp.broadcast_to(scores, (m, m))          # s_i[i, j] = scores[i]
    s_j = s_i.T                                     # s_j[i, j] = scores[j]
    i_col = lax.broadcasted_iota(jnp.int32, (m, m), 0)
    i_row = lax.broadcasted_iota(jnp.int32, (m, m), 1)
    beats = (s_i > s_j) | ((s_i == s_j) & (i_col < i_row))          # [M, M]
    rank = jnp.sum(beats.astype(jnp.int32), axis=0, keepdims=True)  # [1, M]

    # ---- Selection matrix + single-block gather/store ----------------------
    # selmat[k, j] = 1.0 where memory row j has rank k (one-hot per output row)
    k_iota = lax.broadcasted_iota(jnp.int32, (top_k, m), 0)         # [K, M]
    selmat = (rank == k_iota).astype(jnp.float32)                   # [K, M]
    # rows[k, :] = memory[argrank==k, :]; broadcast-multiply + sublane reduce
    # keeps this 4x16x32 contraction on the VPU/XLU (not worth the MXU).
    rows = jnp.sum(selmat[:, :, None] * mem[None, :, :], axis=1)    # [K, H]
    out_ref[...] = rows.astype(out_ref.dtype)                       # one store


# ----------------------------------------------------------------------------
# Batched forward: B independent tasks against one shared memory bank.
#   xs: [B, N, H], memory: [M, H]  ->  [B, top_k, H]
# Leading grid axis is "parallel" (megacore-shardable on v7x); memory's
# index_map is constant so the bank stays VMEM-resident across the grid.
# ----------------------------------------------------------------------------
def task_retrival_forward_batched(xs, memory, top_k):
    b, n, h = xs.shape
    m, _ = memory.shape
    assert top_k <= m, "top_k must not exceed the number of memory rows"
    kernel = functools.partial(_task_retrival_kernel, top_k=top_k)
    return pl.pallas_call(
        kernel,
        out_shape=jax.ShapeDtypeStruct((b, top_k, h), memory.dtype),
        grid=(b,),
        in_specs=[
            pl.BlockSpec((None, n, h), lambda i: (i, 0, 0)),   # per-task x
            pl.BlockSpec((m, h), lambda i: (0, 0)),            # shared memory
        ],
        out_specs=pl.BlockSpec((None, top_k, h), lambda i: (i, 0, 0)),
        compiler_params=pltpu.CompilerParams(
            dimension_semantics=("parallel",)),
    )(xs, memory)


# ----------------------------------------------------------------------------
# TaskRetrival forward (original module semantics: single x)
#   x: [N, H], memory: [M, H]  ->  [top_k, H]
# ----------------------------------------------------------------------------
def task_retrival_forward(x, memory, top_k):
    return task_retrival_forward_batched(x[None], memory, top_k)[0]


# ----------------------------------------------------------------------------
# Reference (plain JAX, mirrors the PyTorch semantics)
# ----------------------------------------------------------------------------
def _reference(x, memory, top_k):
    task_emb = jnp.mean(x, axis=0, keepdims=True)
    num = jnp.sum(memory * task_emb, axis=1)
    den = jnp.maximum(
        jnp.linalg.norm(memory, axis=1) * jnp.linalg.norm(task_emb, axis=1),
        1e-8)
    cos = num / den
    _, idx = jax.lax.top_k(cos, top_k)
    return memory[idx, :]


if __name__ == "__main__":
    key = jax.random.PRNGKey(0)
    k_mem, k_x, k_xb = jax.random.split(key, 3)

    n_memory, h_dim = 16, 32           # memory: [N_memory, H_dim]
    n_samples = 8                      # x: [N_class*K_samples, H_dim]
    top_k = 4
    batch = 3                          # batched variant (launch amortization)

    memory = jax.random.normal(k_mem, (n_memory, h_dim), dtype=jnp.float32)
    x = jax.random.normal(k_x, (n_samples, h_dim), dtype=jnp.float32)
    xs = jax.random.normal(k_xb, (batch, n_samples, h_dim), dtype=jnp.float32)

    # --- single-task forward (module semantics) ---
    retrieved = task_retrival_forward(x, memory, top_k)
    retrieved = jax.block_until_ready(retrieved)
    ref = _reference(x, memory, top_k)
    assert retrieved.shape == (top_k, h_dim)
    assert jnp.allclose(retrieved, ref, atol=1e-5), "single-task mismatch"

    # --- batched forward (one pallas_call, B tasks, shared memory bank) ---
    retrieved_b = task_retrival_forward_batched(xs, memory, top_k)
    retrieved_b = jax.block_until_ready(retrieved_b)
    assert retrieved_b.shape == (batch, top_k, h_dim)
    for bi in range(batch):
        ref_b = _reference(xs[bi], memory, top_k)
        assert jnp.allclose(retrieved_b[bi], ref_b, atol=1e-5), \
            f"batched mismatch at task {bi}"

    print("KERNEL_OK")
</pallas_src>

<mosaic_0001>
module attributes {stable_mosaic.version = 11 : i64} {
  func.func @_task_retrival_kernel(%arg0: i32, %arg1: memref<1x8x32xf32, #tpu.memory_space<vmem>>, %arg2: memref<16x32xf32, #tpu.memory_space<vmem>>, %arg3: memref<1x4x32xf32, #tpu.memory_space<vmem>>) attributes {dimension_semantics = [#tpu.dimension_semantics<parallel>], iteration_bounds = array<i64: 1>, scalar_prefetch = 0 : i64, scratch_operands = 0 : i64, tpu.core_type = #tpu.core_type<tc>, window_params = [{transform_indices = @transform_0, window_bounds = array<i64: 1, 8, 32>}, {pipeline_mode = #tpu.pipeline_mode<synchronous>, transform_indices = @transform_1, window_bounds = array<i64: 16, 32>}, {transform_indices = @transform_2, window_bounds = array<i64: 1, 4, 32>}]} {
    %c0 = arith.constant 0 : index
    %c0_0 = arith.constant 0 : index
    %c0_1 = arith.constant 0 : index
    %0 = vector.load %arg1[%c0, %c0_0, %c0_1] : memref<1x8x32xf32, #tpu.memory_space<vmem>>, vector<1x8x32xf32>
    %1 = vector.shape_cast %0 : vector<1x8x32xf32> to vector<8x32xf32>
    %c0_2 = arith.constant 0 : index
    %c0_3 = arith.constant 0 : index
    %2 = vector.load %arg2[%c0_2, %c0_3] : memref<16x32xf32, #tpu.memory_space<vmem>>, vector<16x32xf32>
    %cst = arith.constant dense<0.000000e+00> : vector<32xf32>
    %3 = vector.multi_reduction <add>, %1, %cst [0] : vector<8x32xf32> to vector<32xf32>
    %4 = vector.shape_cast %3 : vector<32xf32> to vector<1x32xf32>
    %cst_4 = arith.constant 1.250000e-01 : f32
    %5 = vector.broadcast %cst_4 : f32 to vector<1x32xf32>
    %6 = arith.mulf %4, %5 : vector<1x32xf32>
    %7 = vector.broadcast %6 : vector<1x32xf32> to vector<16x32xf32>
    %8 = arith.mulf %2, %7 : vector<16x32xf32>
    %cst_5 = arith.constant dense<0.000000e+00> : vector<16xf32>
    %9 = vector.multi_reduction <add>, %8, %cst_5 [1] : vector<16x32xf32> to vector<16xf32>
    %10 = vector.shape_cast %9 : vector<16xf32> to vector<16x1xf32>
    %11 = arith.mulf %2, %2 : vector<16x32xf32>
    %cst_6 = arith.constant dense<0.000000e+00> : vector<16xf32>
    %12 = vector.multi_reduction <add>, %11, %cst_6 [1] : vector<16x32xf32> to vector<16xf32>
    %13 = vector.shape_cast %12 : vector<16xf32> to vector<16x1xf32>
    %14 = arith.mulf %6, %6 : vector<1x32xf32>
    %15 = vector.shape_cast %14 : vector<1x32xf32> to vector<1x1x32xf32>
    %cst_7 = arith.constant dense<0.000000e+00> : vector<1xf32>
    %16 = vector.multi_reduction <add>, %15, %cst_7 [1, 2] : vector<1x1x32xf32> to vector<1xf32>
    %17 = vector.shape_cast %16 : vector<1xf32> to vector<1x1x1xf32>
    %18 = vector.extract %17[0, 0, 0] : f32 from vector<1x1x1xf32>
    %19 = vector.broadcast %18 : f32 to vector<16x1xf32>
    %20 = arith.mulf %13, %19 : vector<16x1xf32>
    %cst_8 = arith.constant 1.000000e-16 : f32
    %21 = vector.broadcast %cst_8 : f32 to vector<16x1xf32>
    %22 = arith.maximumf %20, %21 : vector<16x1xf32>
    %23 = math.rsqrt %22 : vector<16x1xf32>
    %24 = arith.mulf %10, %23 : vector<16x1xf32>
    %25 = vector.shape_cast %24 : vector<16x1xf32> to vector<16x1xf32>
    %26 = vector.broadcast %25 : vector<16x1xf32> to vector<16x16xf32>
    %27 = tpu.transpose %26, [1, 0] : vector<16x16xf32> -> vector<16x16xf32>
    %28 = tpu.iota {dimensions = array<i32: 0>} : vector<16x16xi32>
    %29 = tpu.iota {dimensions = array<i32: 1>} : vector<16x16xi32>
    %30 = arith.cmpf ogt, %26, %27 : vector<16x16xf32>
    %31 = arith.cmpf oeq, %26, %27 : vector<16x16xf32>
    %32 = arith.cmpi slt, %28, %29 : vector<16x16xi32>
    %33 = arith.andi %31, %32 : vector<16x16xi1>
    %34 = arith.ori %30, %33 : vector<16x16xi1>
    %35 = arith.extui %34 : vector<16x16xi1> to vector<16x16xi32>
    %cst_9 = arith.constant dense<0> : vector<16xi32>
    %36 = vector.multi_reduction <add>, %35, %cst_9 [0] : vector<16x16xi32> to vector<16xi32>
    %37 = vector.shape_cast %36 : vector<16xi32> to vector<1x16xi32>
    %38 = tpu.iota {dimensions = array<i32: 0>} : vector<4x16xi32>
    %39 = vector.broadcast %37 : vector<1x16xi32> to vector<4x16xi32>
    %40 = arith.cmpi eq, %39, %38 : vector<4x16xi32>
    %41 = arith.extui %40 : vector<4x16xi1> to vector<4x16xi32>
    %42 = arith.sitofp %41 : vector<4x16xi32> to vector<4x16xf32>
    %43 = vector.shape_cast %42 : vector<4x16xf32> to vector<4x16x1xf32>
    %44 = vector.shape_cast %2 : vector<16x32xf32> to vector<1x16x32xf32>
    %45 = vector.broadcast %43 : vector<4x16x1xf32> to vector<4x16x32xf32>
    %46 = vector.broadcast %44 : vector<1x16x32xf32> to vector<4x16x32xf32>
    %47 = arith.mulf %45, %46 : vector<4x16x32xf32>
    %cst_10 = arith.constant dense<0.000000e+00> : vector<4x32xf32>
    %48 = vector.multi_reduction <add>, %47, %cst_10 [1] : vector<4x16x32xf32> to vector<4x32xf32>
    %c0_11 = arith.constant 0 : index
    %c0_12 = arith.constant 0 : index
    %c0_13 = arith.constant 0 : index
    %49 = vector.load %arg3[%c0_11, %c0_12, %c0_13] : memref<1x4x32xf32, #tpu.memory_space<vmem>>, vector<1x4x32xf32>
    %50 = vector.shape_cast %49 : vector<1x4x32xf32> to vector<4x32xf32>
    %51 = vector.shape_cast %48 : vector<4x32xf32> to vector<1x4x32xf32>
    tpu.vector_store %arg3[%c0_11, %c0_12, %c0_13], %51 {strides = array<i32>} : memref<1x4x32xf32, #tpu.memory_space<vmem>>, vector<1x4x32xf32>,
    return
  }
  func.func @transform_0(%arg0: i32) -> (i32, i32, i32) {
    %c0_i32 = arith.constant 0 : i32
    %c0_i32_0 = arith.constant 0 : i32
    %c0_i32_1 = arith.constant 0 : i32
    return %arg0, %c0_i32, %c0_i32_0 : i32, i32, i32
  }
  func.func @transform_1(%arg0: i32) -> (i32, i32) {
    %c0_i32 = arith.constant 0 : i32
    %c0_i32_0 = arith.constant 0 : i32
    %c0_i32_1 = arith.constant 0 : i32
    return %c0_i32, %c0_i32_0 : i32, i32
  }
  func.func @transform_2(%arg0: i32) -> (i32, i32, i32) {
    %c0_i32 = arith.constant 0 : i32
    %c0_i32_0 = arith.constant 0 : i32
    %c0_i32_1 = arith.constant 0 : i32
    return %arg0, %c0_i32, %c0_i32_0 : i32, i32, i32
  }
}

</mosaic_0001>

<bundles_post_ra>
// kernel: tpu_custom_call.1
= control target key start
LH: loop header
LB: loop body
LE: loop exit
PB: predicated region body
PF: predicated region fallthrough
CT: control target
= control target key end

     0   :  { %7 = vsyncpa [#allocation3], 0  ;;  %s408_s0 = inlined_call_operand.hbm [shape: f32[1,8,32], index: 0, kind: input, shape index: {}]   ;;  %s409_s1 = inlined_call_operand.hbm [shape: f32[16,32], index: 1, kind: input, shape index: {}]   ;;  %s410_s2 = inlined_call_operand.hbm [shape: f32[1,4,32], index: 2, kind: output, shape index: {}]  }
   0x1   :  { %8 = vsyncpa [#allocation6], 0 }
   0x2   :  { %9 = vsyncpa [#allocation4], 0  ;;  %s346_s9 = smov [#allocation2]   ;;  %s347_s11 = smov [#allocation5]  }
   0x3   :  { %s16_s10 = sshll.u32 %s346_s9, 4  ;;  %s25_s12 = sshll.u32 %s347_s11, 4  ;;  %s17_s10 = int_to_ptr.vmem [resolvable:$true] %s16_s10  ;;  %s26_s12 = int_to_ptr.vmem [resolvable:$true] %s25_s12 }
   0x4   :  { %s288_s13 = scalar_lea.vmem %s17_s10, 128  ;;  %p293_p1 = scmp.lt.s32.totalorder %s17_s10, %s17_s10 }
   0x5   :  { %p289_p0 = scmp.ne.s32.totalorder %s17_s10, %s288_s13  ;;  %p294_p2 = scmp.lt.s32.totalorder %s288_s13, %s288_s13 }
   0x7   :  { %p295_p3 = por %p294_p2, %p293_p1 }
   0x9   :  { %p296_p4 = pnand %p295_p3, %p289_p0 }
   0xb   :  { %299 = shalt.err (!%p296_p4)
}
   0xc   :  { %19 = dma.hbm_to_vmem [thread:$0]  %s408_s0, 128, %s17_s10, [#allocation3]  }
   0xd   :  { %s308_s16 = scalar_lea.vmem %s26_s12, 256  ;;  %p313_p6 = scmp.lt.s32.totalorder %s26_s12, %s26_s12 }
   0xe   :  { %p309_p5 = scmp.ne.s32.totalorder %s26_s12, %s308_s16  ;;  %p314_p7 = scmp.lt.s32.totalorder %s308_s16, %s308_s16 }
  0x10   :  { %p315_p8 = por %p314_p7, %p313_p6 }
  0x12   :  { %p316_p9 = pnand %p315_p8, %p309_p5 }
  0x14   :  { %319 = shalt.err (!%p316_p9)
}
  0x15   :  { %s348_s17 = smov 128   ;;  %s349_s18 = smov 8  }
  0x16   :  { %31 = dma.hbm_to_vmem [thread:$0]  %s409_s1, 256, %s26_s12, [#allocation6], %s348_s17, %s348_s17, %s349_s18  }
  0x17   :  { %340 = dma.done.wait [#allocation3], 128  }
  0x18   :  { %341 = vsyncadd [#allocation3], 4294967168 }
  0x19   :  { %342 = dma.done.wait [#allocation6], 256  }
  0x1a   :  { %343 = vsyncadd [#allocation6], 4294967040  ;;  %vm41_vm0 = vcmask 261120   ;;  %v38_v0 = vld [vmem:[#allocation2] sm:$0xff]  ;;  %v374_v1 = vld [vmem:[#allocation5 + $0x8] sm:$0xff]  ;;  %vm67_vm1 = vcmask 253952   ;;  %v119_v41 = vlaneseq }
  0x1b   :  { %v42_v2 = vsel %vm41_vm0, %v38_v0, 0.0  ;;  %v59_v3 = vmul.f32 %v374_v1, %v374_v1  ;;  %v380_v11 = vld [vmem:[#allocation5] sm:$0xff]  ;;  %v350_v47 = vmov 0   ;;  %vm136_vm10 = vcmask 130048   ;;  %s352_s1 = smov [#allocation7]  }
  0x1c   :  { %v43_v4 = vrot.slane %v42_v2, 4  ;;  %v58_v14 = vmul.f32 %v380_v11, %v380_v11  ;;  %v120_v42 = vshrl.u32 %v119_v41, 7  ;;  %v123_v43 = vand.u32 127, %v119_v41  ;;  %s256_s21 = sshll.u32 %s352_s1, 4  ;;  %s257_s21 = int_to_ptr.vmem [resolvable:$true] %s256_s21 }
  0x1d   :  { %v63_v5 = vsel %vm41_vm0, %v59_v3, 0.0  ;;  %v351_v60 = vmov 0.0   ;;  %vm241_vm14 = vcmask 1041409   ;;  %vm243_vm15 = vcmask 1042434   ;;  %s320_s22 = scalar_lea.vmem %s257_s21, 64  ;;  %p325_p11 = scmp.lt.s32.totalorder %s257_s21, %s257_s21 }
  0x1e   :  { %v44_v6 = vadd.f32 %v43_v4, %v42_v2  ;;  %64 = vadd.xlane.f32.xlu1 %v63_v5  ;;  %v60_v18 = vsel %vm41_vm0, %v58_v14, 0.0  ;;  %vm128_vm2 = vcmp.lt.s32.totalorder %v120_v42, %v123_v43  ;;  %v121_v44 = vadd.s32 8, %v120_v42  ;;  %p321_p10 = scmp.ne.s32.totalorder %s257_s21, %s320_s22  ;;  %p326_p12 = scmp.lt.s32.totalorder %s320_s22, %s320_s22 }
  0x1f   :  { %v151_v59 = vsub.s32 0, %v120_v42  ;;  %v162_v63 = vsub.s32 1, %v120_v42  ;;  %v173_v2 = vsub.s32 2, %v120_v42  ;;  %v184_v4 = vsub.s32 3, %v120_v42 }
  0x20   :  { %v45_v7 = vrot.slane %v44_v6, 2  ;;  %vm129_vm7 = vcmp.lt.s32.totalorder %v121_v44, %v123_v43  ;;  %p327_p13 = por %p326_p12, %p325_p11 }
  0x22   :  { %v46_v8 = vadd.f32 %v45_v7, %v44_v6  ;;  %p328_p0 = pnand %p327_p13, %p321_p10 }
  0x24   :  { %v47_v9 = vrot.slane %v46_v8, 1 }
  0x26   :  { %v48_v10 = vadd.f32 %v47_v9, %v46_v8 }
  0x28   :  { %v49_v12 = vmul.f32 0.125, %v48_v10 }
  0x2a   :  { %v66_v13 = vmul.f32 %v49_v12, %v49_v12  ;;  %v50_v15 = vmul.f32 %v49_v12, %v380_v11  ;;  %v51_v19 = vmul.f32 %v49_v12, %v374_v1 }
  0x2c   :  { %v68_v16 = vsel %vm67_vm1, %v66_v13, 0.0  ;;  %v52_v17 = vsel %vm41_vm0, %v50_v15, 0.0  ;;  %v55_v20 = vsel %vm41_vm0, %v51_v19, 0.0  ;;  %vm248_vm1 = vcmask 257024  }
  0x2d   :  { %69 = vadd.xlane.f32.xlu0 %v68_v16  ;;  %53 = vadd.xlane.f32.xlu1 %v52_v17 }
  0x31   :  { %61 = vadd.xlane.f32.xlu0 %v60_v18 }
  0x35   :  { %56 = vadd.xlane.f32.xlu0 %v55_v20 }
  0xa7   :  { %v65_v28 = vpop.xlane.xlu1 %64 }
  0xb6   :  { %v70_v21 = vpop.xlane.xlu0 %69  ;;  %v54_v35 = vpop.xlane.xlu1 %53 }
  0xb7   :  { %v71_v22 = vrot.slane %v70_v21, 4 }
  0xb9   :  { %v72_v23 = vadd.f32 %v71_v22, %v70_v21 }
  0xba   :  { %v62_v29 = vpop.xlane.xlu0 %61 }
  0xbb   :  { %v73_v24 = vrot.slane %v72_v23, 2 }
  0xbd   :  { %v74_v25 = vadd.f32 %v73_v24, %v72_v23 }
  0xbe   :  { %v57_v39 = vpop.xlane.xlu0 %56 }
  0xbf   :  { %v75_v26 = vrot.slane %v74_v25, 1 }
  0xc1   :  { %v76_v27 = vadd.f32 %v75_v26, %v74_v25 }
  0xc3   :  { %267 = vpush %v76_v27 }
  0xf4   :  { %s268_s0 = spop %267 }
  0xf5   :  { %v78_v30 = vstv %s268_s0 }
  0xf6   :  { %v80_v31 = vmul.f32 %v78_v30, %v65_v28  ;;  %v79_v32 = vmul.f32 %v78_v30, %v62_v29 }
  0xf8   :  { %v81_v33 = vmax.f32 %v79_v32, 1e-16  ;;  %v82_v34 = vmax.f32 %v80_v31, 1e-16 }
  0xfa   :  { %276 = vrsqrt.f32 %v81_v33 }
  0xfb   :  { %278 = vrsqrt.f32 %v82_v34 }
 0x107   :  { %v277_v36 = vpop.eup %276 }
 0x108   :  { %v85_v37 = vmul.f32 %v277_v36, %v54_v35  ;;  %v279_v38 = vpop.eup %278 }
 0x109   :  { %v86_v40 = vmul.f32 %v279_v38, %v57_v39 }
 0x10a   :  { %87 = vxpose.xlu1.b32.start [1/2] (short) (narrow) %v85_v37, 16 }
 0x10e   :  { %88 = vxpose.xlu1.b32.end [2/2] (short) (narrow) %v86_v40, 16 }
 0x186   :  { %v103_v45 = vpop.trf.xlu1 }
 0x187   :  { %vm124_vm3 = vcmp.gt.f32.partialorder %v85_v37, %v103_v45  ;;  %vm126_vm4 = vcmp.eq.f32.partialorder %v85_v37, %v103_v45 }
 0x188   :  { %vm130_vm5 = vmand %vm126_vm4, %vm128_vm2 }
 0x189   :  { %vm132_vm6 = vmor %vm124_vm3, %vm130_vm5 }
 0x18a   :  { %v104_v46 = vpop.trf.xlu1  ;;  %v134_v48 = vsel %vm132_vm6, 1, %v350_v47 }
 0x18b   :  { %vm125_vm8 = vcmp.gt.f32.partialorder %v86_v40, %v104_v46  ;;  %vm127_vm9 = vcmp.eq.f32.partialorder %v86_v40, %v104_v46  ;;  %v137_v50 = vsel %vm136_vm10, %v134_v48, 0 }
 0x18c   :  { %vm131_vm11 = vmand %vm127_vm9, %vm129_vm7 }
 0x18d   :  { %vm133_vm12 = vmor %vm125_vm8, %vm131_vm11 }
 0x18e   :  { %v135_v49 = vsel %vm133_vm12, 1, %v350_v47 }
 0x18f   :  { %v138_v51 = vsel %vm136_vm10, %v135_v49, 0 }
 0x190   :  { %v139_v52 = vadd.s32 %v138_v51, %v137_v50 }
 0x192   :  { %v140_v53 = vrot.slane %v139_v52, 4 }
 0x194   :  { %v141_v54 = vadd.s32 %v140_v53, %v139_v52 }
 0x196   :  { %v142_v55 = vrot.slane %v141_v54, 2 }
 0x198   :  { %v143_v56 = vadd.s32 %v142_v55, %v141_v54 }
 0x19a   :  { %v144_v57 = vrot.slane %v143_v56, 1 }
 0x19c   :  { %v145_v58 = vadd.s32 %v144_v57, %v143_v56 }
 0x19e   :  { %vm146_vm13 = vcmp.eq.s32.totalorder %v145_v58, %v120_v42 }
 0x19f   :  { %v266_v61 = vsel %vm146_vm13, 1.0, %v351_v60 }
 0x1a0   :  { %v152_v62 = vrot.slane %v266_v61, %v151_v59  ;;  %v163_v0 = vrot.slane %v266_v61, %v162_v63  ;;  %v174_v3 = vrot.slane %v266_v61, %v173_v2  ;;  %v185_v5 = vrot.slane %v266_v61, %v184_v4 }
 0x1a2   :  { %154 = vbcast.lane.b32.xlu0 %v152_v62, 256 }
 0x1a6   :  { %158 = vbcast.lane.b32.xlu0 %v152_v62, 264 }
 0x1aa   :  { %165 = vbcast.lane.b32.xlu0 %v163_v0, 256 }
 0x1ae   :  { %169 = vbcast.lane.b32.xlu0 %v163_v0, 264 }
 0x1b2   :  { %176 = vbcast.lane.b32.xlu0 %v174_v3, 256 }
 0x1b6   :  { %180 = vbcast.lane.b32.xlu0 %v174_v3, 264 }
 0x1ba   :  { %187 = vbcast.lane.b32.xlu0 %v185_v5, 256 }
 0x1be   :  { %191 = vbcast.lane.b32.xlu0 %v185_v5, 264 }
 0x214   :  { %v155_v6 = vpop.permute.xlu0 %154 }
 0x215   :  { %v193_v13 = vmul.f32 %v155_v6, %v380_v11 }
 0x217   :  { %v201_v20 = vsel %vm41_vm0, %v193_v13, 0.0 }
 0x218   :  { %v159_v7 = vpop.permute.xlu0 %158 }
 0x219   :  { %v194_v9 = vmul.f32 %v159_v7, %v374_v1 }
 0x21b   :  { %v202_v15 = vsel %vm41_vm0, %v194_v9, 0.0 }
 0x21c   :  { %v166_v8 = vpop.permute.xlu0 %165  ;;  %v203_v21 = vadd.f32 %v202_v15, %v201_v20 }
 0x21d   :  { %v195_v10 = vmul.f32 %v166_v8, %v380_v11 }
 0x21e   :  { %v204_v26 = vrot.slane %v203_v21, 4 }
 0x21f   :  { %v210_v16 = vsel %vm41_vm0, %v195_v10, 0.0 }
 0x220   :  { %v170_v12 = vpop.permute.xlu0 %169  ;;  %v205_v32 = vadd.f32 %v204_v26, %v203_v21 }
 0x221   :  { %v196_v14 = vmul.f32 %v170_v12, %v374_v1 }
 0x222   :  { %v206_v39 = vrot.slane %v205_v32, 2 }
 0x223   :  { %v211_v17 = vsel %vm41_vm0, %v196_v14, 0.0 }
 0x224   :  { %v212_v18 = vadd.f32 %v211_v17, %v210_v16  ;;  %v177_v19 = vpop.permute.xlu0 %176  ;;  %v207_v46 = vadd.f32 %v206_v39, %v205_v32 }
 0x225   :  { %v197_v22 = vmul.f32 %v177_v19, %v380_v11 }
 0x226   :  { %v213_v23 = vrot.slane %v212_v18, 4 }
 0x227   :  { %v219_v27 = vsel %vm41_vm0, %v197_v22, 0.0 }
 0x228   :  { %v181_v24 = vpop.permute.xlu0 %180  ;;  %v214_v29 = vadd.f32 %v213_v23, %v212_v18 }
 0x229   :  { %v198_v25 = vmul.f32 %v181_v24, %v374_v1 }
 0x22a   :  { %v215_v35 = vrot.slane %v214_v29, 2 }
 0x22b   :  { %v220_v28 = vsel %vm41_vm0, %v198_v25, 0.0 }
 0x22c   :  { %v221_v30 = vadd.f32 %v220_v28, %v219_v27  ;;  %v188_v31 = vpop.permute.xlu0 %187  ;;  %v216_v43 = vadd.f32 %v215_v35, %v214_v29 }
 0x22d   :  { %v199_v34 = vmul.f32 %v188_v31, %v380_v11  ;;  %v208_v11 = vrot.slane %v207_v46, 1 }
 0x22e   :  { %v222_v33 = vrot.slane %v221_v30, 4  ;;  %v217_v48 = vrot.slane %v216_v43, 1 }
 0x22f   :  { %v228_v41 = vsel %vm41_vm0, %v199_v34, 0.0 }
 0x230   :  { %v223_v36 = vadd.f32 %v222_v33, %v221_v30  ;;  %v192_v37 = vpop.permute.xlu0 %191  ;;  %v218_v52 = vadd.f32 %v217_v48, %v216_v43 }
 0x231   :  { %v200_v38 = vmul.f32 %v192_v37, %v374_v1  ;;  %v209_v1 = vadd.f32 %v208_v11, %v207_v46 }
 0x232   :  { %v224_v40 = vrot.slane %v223_v36, 2 }
 0x233   :  { %v229_v42 = vsel %vm41_vm0, %v200_v38, 0.0  ;;  %vm245_vm0 = vcmask 1043459   ;;  %v242_v57 = vsel %vm241_vm14, %v218_v52, %v209_v1 }
 0x234   :  { %v230_v44 = vadd.f32 %v229_v42, %v228_v41  ;;  %v225_v45 = vadd.f32 %v224_v40, %v223_v36 }
 0x236   :  { %v231_v47 = vrot.slane %v230_v44, 4  ;;  %v226_v50 = vrot.slane %v225_v45, 1 }
 0x238   :  { %v232_v49 = vadd.f32 %v231_v47, %v230_v44  ;;  %v227_v54 = vadd.f32 %v226_v50, %v225_v45 }
 0x23a   :  { %v233_v51 = vrot.slane %v232_v49, 2  ;;  %v244_v58 = vsel %vm243_vm15, %v227_v54, %v242_v57 }
 0x23c   :  { %v234_v53 = vadd.f32 %v233_v51, %v232_v49 }
 0x23e   :  { %v235_v55 = vrot.slane %v234_v53, 1 }
 0x240   :  { %v236_v56 = vadd.f32 %v235_v55, %v234_v53 }
 0x242   :  { %v246_v59 = vsel %vm245_vm0, %v236_v56, %v244_v58 }
 0x243   :  { %249 = vst.msk [vmem:[#allocation7] sm:$0xf] %vm248_vm1, %v246_v59 }
 0x244   :  { %331 = shalt.err (!%p328_p0)
}
 0x245   :  { %259 = dma.vmem_to_hbm [thread:$0]  %s257_s21, 64, %s410_s2, [#allocation4]  }
 0x246   :  { %344 = dma.done.wait [#allocation4], 64  }
 0x247   :  { %345 = vsyncadd [#allocation4], 4294967232 }
 0x248   :  { %263 = vsyncpa [#allocation3], 1 }
 0x249   :  { %264 = vsyncpa [#allocation6], 1 }
 0x24a   :  { %265 = vsyncpa [#allocation4], 1 }

</bundles_post_ra>
